<compile_context>
chip_gen: v6e
topology: v6e:2x2x1
jax: 0.10.0
libtpu: 0.0.40
codegen_flags: <defaults>
</compile_context>

<pallas_src>
import math
from functools import partial

import numpy as np
import jax
import jax.numpy as jnp
from jax import lax
from jax.experimental import pallas as pl
from jax.experimental.pallas import tpu as pltpu

DIM = 512            # transformer width
IN_DIM = 1024        # _fc1 input width
HEADS = 8
DHEAD = DIM // HEADS            # 64
LANDMARKS = DIM // 2            # 256  (num_landmarks)
PINV_ITERS = 6
RES_KERNEL = 33                 # Nystrom residual depthwise conv length
LN_EPS = 1e-5
F32 = jnp.float32
BF16 = jnp.bfloat16

_VMEM = pl.BlockSpec(memory_space=pltpu.MemorySpace.VMEM)


def _vmem_limit_bytes():
    """Generation-aware scoped-VMEM request (never the full physical VMEM)."""
    try:
        cap = int(getattr(pltpu.get_tpu_info(), "vmem_capacity_bytes", 0))
    except Exception:
        cap = 0
    if cap <= 0:
        return 48 * 1024 * 1024          # conservative fallback (fits v7x too)
    return int(min((cap * 3) // 4, 96 * 1024 * 1024))


_VMEM_LIMIT = _vmem_limit_bytes()


def _cparams(**kw):
    return pltpu.CompilerParams(vmem_limit_bytes=_VMEM_LIMIT, **kw)


def _round_up(x, m):
    return ((x + m - 1) // m) * m


# ----------------------------- kernel helpers -----------------------------

def _softmax(s):
    m = jnp.max(s, axis=-1, keepdims=True)
    e = jnp.exp(s - m)
    return e * pl.reciprocal(jnp.sum(e, axis=-1, keepdims=True), approx=True)


def _layernorm(x, g, b):
    mu = jnp.mean(x, axis=-1, keepdims=True)
    xc = x - mu
    var = jnp.mean(xc * xc, axis=-1, keepdims=True)
    return xc * lax.rsqrt(var + LN_EPS) * g + b


def _shift_rows_zero(x, off):
    """y[i] = x[i + off] when 0 <= i + off < n, else 0 (zero-padded shift)."""
    n, d = x.shape
    if off == 0:
        return x
    z = jnp.zeros((abs(off), d), x.dtype)
    if off > 0:
        return jnp.concatenate([x[off:, :], z], axis=0)
    return jnp.concatenate([z, x[:n + off, :]], axis=0)


# ----------------------------- _fc1 (Linear + ReLU), row tiled -----------------------------

def _fc1_kernel(x_ref, w_ref, b_ref, o_ref):
    y = jnp.dot(x_ref[...].astype(BF16), w_ref[...],
                preferred_element_type=F32) + b_ref[...]
    o_ref[...] = jnp.maximum(y, 0.0)


def fc1_call(x, w_bf, b):
    n = x.shape[0]
    n8 = _round_up(max(n, 8), 8)
    if n8 != n:
        x = jnp.concatenate([x, jnp.zeros((n8 - n, x.shape[1]), x.dtype)], axis=0)
    tile = min(512, n8)
    out = pl.pallas_call(
        _fc1_kernel,
        out_shape=jax.ShapeDtypeStruct((n8, DIM), F32),
        grid=(pl.cdiv(n8, tile),),
        in_specs=[pl.BlockSpec((tile, IN_DIM), lambda i: (i, 0)),
                  pl.BlockSpec((IN_DIM, DIM), lambda i: (0, 0)),   # weight resident
                  pl.BlockSpec((1, DIM), lambda i: (0, 0))],
        out_specs=pl.BlockSpec((tile, DIM), lambda i: (i, 0)),
        compiler_params=_cparams(dimension_semantics=("parallel",)),
    )(x, w_bf, b)
    return out[:n] if n8 != n else out


# ------------------- TransLayer = x + NystromAttention(LN(x)) -------------------

def _translayer_kernel(x_ref, lng_ref, lnb_ref, wqkv_ref, wout_ref, bout_ref,
                       wres_ref, o_ref, out_sc, *, pad, l):
    n_p = x_ref.shape[0]                     # padded length, multiple of LANDMARKS

    x = x_ref[...]                                              # [n_p, DIM]
    xn = _layernorm(x, lng_ref[...], lnb_ref[...])
    if pad:
        row = lax.broadcasted_iota(jnp.int32, (n_p, 1), 0)
        xn = jnp.where(row >= pad, xn, 0.0)   # F.pad(value=0) on the normed input

    # QKV projection (bf16 operands, f32 accumulate); q scale folded into weights.
    qkv = jnp.dot(xn.astype(BF16), wqkv_ref[...], preferred_element_type=F32)
    q_all = qkv[:, 0 * DIM:1 * DIM]
    k_all = qkv[:, 1 * DIM:2 * DIM]
    v_all = qkv[:, 2 * DIM:3 * DIM]

    # ---- residual depthwise (33,1) conv over the sequence: 33 shifted FMAs ----
    half = RES_KERNEL // 2
    res = jnp.zeros((n_p, DIM), F32)
    for kk in range(RES_KERNEL):
        off = kk - half
        res = res + _shift_rows_zero(v_all, off) * wres_ref[kk:kk + 1, :]
    out_sc[...] = res                        # scratch initialised with the residual

    q_bf = q_all.astype(BF16)
    k_bf = k_all.astype(BF16)
    v_bf = v_all.astype(BF16)

    # ---- landmarks: mean over groups of l consecutive rows (via 0/1 group matmul) ----
    if l == 1:
        ql = q_all
        kl = k_all
    else:
        li = lax.broadcasted_iota(jnp.int32, (LANDMARKS, n_p), 0)
        ri = lax.broadcasted_iota(jnp.int32, (LANDMARKS, n_p), 1)
        G = (ri // l == li).astype(BF16)
        inv_l = 1.0 / float(l)
        ql = jnp.dot(G, q_bf, preferred_element_type=F32) * inv_l
        kl = jnp.dot(G, k_bf, preferred_element_type=F32) * inv_l
    ql_bf = ql.astype(BF16)
    kl_bf = kl.astype(BF16)

    dn = (((1,), (1,)), ((), ()))            # contract last dims:  A @ B.T

    # ---- pass 1: landmark attention a2 per head + global col/row maxima ----
    a2_list = []
    cmax = None
    rmax = None
    for h in range(HEADS):
        sl = slice(h * DHEAD, (h + 1) * DHEAD)
        a2 = _softmax(lax.dot_general(ql_bf[:, sl], kl_bf[:, sl], dn,
                                      preferred_element_type=F32))    # [L, L]
        absa = jnp.abs(a2)
        c = jnp.max(jnp.sum(absa, axis=-1, keepdims=True), axis=0, keepdims=True)
        r = jnp.max(jnp.sum(absa, axis=-2, keepdims=True), axis=1, keepdims=True)
        cmax = c if cmax is None else jnp.maximum(cmax, c)
        rmax = r if rmax is None else jnp.maximum(rmax, r)
        a2_list.append(a2)
    inv_denom = 1.0 / (cmax * rmax)          # [1,1], global over heads (torch.max)

    ii = lax.broadcasted_iota(jnp.int32, (LANDMARKS, LANDMARKS), 0)
    jj = lax.broadcasted_iota(jnp.int32, (LANDMARKS, LANDMARKS), 1)
    eye = (ii == jj).astype(F32)

    # ---- pass 2: one head at a time (only one n_p-sized a1/a3/t1 live) ----
    # TODO(synk): bf16 matmul operands in the Newton pinv (f32 combines/accum);
    #             re-validate tolerance vs an f32 reference for training parity.
    for h in range(HEADS):
        sl = slice(h * DHEAD, (h + 1) * DHEAD)
        a2 = a2_list[h]
        a2_bf = a2.astype(BF16)

        # Moore-Penrose iterative pseudo-inverse
        z = a2.T * inv_denom
        for _ in range(PINV_ITERS):
            xz = jnp.dot(a2_bf, z.astype(BF16), preferred_element_type=F32)
            xz_bf = xz.astype(BF16)
            t = 7.0 * eye - xz
            t = 15.0 * eye - jnp.dot(xz_bf, t.astype(BF16), preferred_element_type=F32)
            t = 13.0 * eye - jnp.dot(xz_bf, t.astype(BF16), preferred_element_type=F32)
            z = 0.25 * jnp.dot(z.astype(BF16), t.astype(BF16), preferred_element_type=F32)

        a1 = _softmax(lax.dot_general(q_bf[:, sl], kl_bf[:, sl], dn,
                                      preferred_element_type=F32))      # [n_p, L]
        a3 = _softmax(lax.dot_general(ql_bf[:, sl], k_bf[:, sl], dn,
                                      preferred_element_type=F32))      # [L, n_p]
        a3v = jnp.dot(a3.astype(BF16), v_bf[:, sl],
                      preferred_element_type=F32)                       # [L, Dh]
        t1 = jnp.dot(a1.astype(BF16), z.astype(BF16),
                     preferred_element_type=F32)                        # [n_p, L]
        oh = jnp.dot(t1.astype(BF16), a3v.astype(BF16),
                     preferred_element_type=F32)                        # [n_p, Dh]
        # accumulate into this head's lane slice of the output scratch
        out_sc[:, h * DHEAD:(h + 1) * DHEAD] += oh

    # to_out projection (single K=512 matmul from the lane-dense scratch) + residual
    y = jnp.dot(out_sc[...].astype(BF16), wout_ref[...],
                preferred_element_type=F32) + bout_ref[...]
    o_ref[...] = x_ref[...] + y


def trans_layer_call(h, p):
    n_tok = h.shape[0]
    rem = n_tok % LANDMARKS
    pad = (LANDMARKS - rem) if rem > 0 else 0
    n_p = n_tok + pad
    l = n_p // LANDMARKS                         # == ceil(n_tok / LANDMARKS)
    h_pad = jnp.concatenate([jnp.zeros((pad, DIM), F32), h], axis=0) if pad else h
    out_pad = pl.pallas_call(
        partial(_translayer_kernel, pad=pad, l=l),
        out_shape=jax.ShapeDtypeStruct((n_p, DIM), F32),
        in_specs=[_VMEM] * 7,
        out_specs=_VMEM,
        scratch_shapes=[pltpu.VMEM((n_p, DIM), F32)],
        compiler_params=_cparams(),
    )(h_pad, p['ln_g'], p['ln_b'], p['w_qkv'], p['w_out'], p['b_out'], p['res_taps'])
    return out_pad[pad:]


# ----------------------------- PPEG: 49-tap fused stencil -----------------------------

def _ppeg_kernel(xpad_ref, w_ref, b_ref, o_ref, *, Hs, Ws):
    # xpad_ref: [Hs+6, Ws+6, DIM] zero-padded grid; w_ref: [49, DIM] fused taps
    acc = jnp.zeros((Hs, Ws, DIM), F32) + b_ref[...].reshape(1, 1, DIM)
    for ky in range(7):
        for kx in range(7):
            w = w_ref[ky * 7 + kx:ky * 7 + kx + 1, :].reshape(1, 1, DIM)
            win = xpad_ref[ky:ky + Hs, kx:kx + Ws, :]
            acc = acc + win * w
    o_ref[...] = acc


def ppeg_call(feat, w_taps, bias, Hs, Ws):
    xg = feat.reshape(Hs, Ws, DIM)
    xpad = jnp.pad(xg, ((3, 3), (3, 3), (0, 0)))
    out = pl.pallas_call(
        partial(_ppeg_kernel, Hs=Hs, Ws=Ws),
        out_shape=jax.ShapeDtypeStruct((Hs, Ws, DIM), F32),
        in_specs=[_VMEM, _VMEM, _VMEM],
        out_specs=_VMEM,
        compiler_params=_cparams(),
    )(xpad, w_taps, bias)
    return out.reshape(Hs * Ws, DIM)


# ----------------------------- final LayerNorm + _fc2 -----------------------------

def _head_kernel(x_ref, g_ref, b_ref, w_ref, bw_ref, o_ref):
    xn = _layernorm(x_ref[...], g_ref[...], b_ref[...])
    o_ref[...] = jnp.dot(xn, w_ref[...], preferred_element_type=F32) + bw_ref[...]


def head_call(cls_row, g, b, w, bw, n_classes):
    return pl.pallas_call(
        _head_kernel,
        out_shape=jax.ShapeDtypeStruct((1, n_classes), F32),
        in_specs=[_VMEM] * 5,
        out_specs=_VMEM,
        compiler_params=_cparams(),
    )(cls_row, g, b, w, bw)


# ----------------------------- parameter setup (glue) -----------------------------

def _normal(key, shape, std=0.02):
    return jax.random.normal(key, shape, dtype=F32) * std


def build_ppeg_taps(w7, b7, w5, b5, w3, b3):
    """Fuse identity + 7x7/5x5/3x3 depthwise convs into one [49, DIM] tap table."""
    W = np.zeros((7, 7, DIM), np.float32)
    W += np.transpose(w7, (1, 2, 0))
    W[1:6, 1:6] += np.transpose(w5, (1, 2, 0))
    W[2:5, 2:5] += np.transpose(w3, (1, 2, 0))
    W[3, 3] += 1.0                                   # identity (cnn_feat) term
    bias = (b7 + b5 + b3).reshape(1, DIM)
    return jnp.asarray(W.reshape(49, DIM), F32), jnp.asarray(bias, F32)


def build_res_taps(res_w):
    """res_w: np [HEADS, 33] -> [33, DIM] per-tap, per-lane (head-broadcast) weights."""
    taps = np.repeat(res_w.T[:, :, None], DHEAD, axis=2).reshape(RES_KERNEL, DIM)
    return jnp.asarray(taps, F32)


def init_params(key, n_classes):
    keys = jax.random.split(key, 24)
    ki = iter(keys)

    def nk():
        return next(ki)

    def layer_params():
        w_qkv = _normal(nk(), (DIM, 3 * DIM))             # to_qkv (bias=False), [in, out]
        w_qkv = w_qkv.at[:, :DIM].multiply(DHEAD ** -0.5)  # fold q scale into weights
        res_w = np.asarray(jax.random.normal(nk(), (HEADS, RES_KERNEL), dtype=F32)) * 0.05
        return {
            'ln_g': jnp.ones((1, DIM), F32),
            'ln_b': jnp.zeros((1, DIM), F32),
            'w_qkv': w_qkv.astype(BF16),
            'w_out': _normal(nk(), (DIM, DIM)).astype(BF16),   # to_out linear, [in, out]
            'b_out': _normal(nk(), (1, DIM)),
            'res_taps': build_res_taps(res_w),
        }

    fc1_w = _normal(nk(), (IN_DIM, DIM))
    fc1_b = _normal(nk(), (1, DIM))
    cls_token = jax.random.normal(nk(), (1, DIM), dtype=F32)
    layer1 = layer_params()
    layer2 = layer_params()

    w7 = np.asarray(jax.random.normal(nk(), (DIM, 7, 7), dtype=F32)) * 0.05
    b7 = np.asarray(jax.random.normal(nk(), (DIM,), dtype=F32)) * 0.02
    w5 = np.asarray(jax.random.normal(nk(), (DIM, 5, 5), dtype=F32)) * 0.05
    b5 = np.asarray(jax.random.normal(nk(), (DIM,), dtype=F32)) * 0.02
    w3 = np.asarray(jax.random.normal(nk(), (DIM, 3, 3), dtype=F32)) * 0.05
    b3 = np.asarray(jax.random.normal(nk(), (DIM,), dtype=F32)) * 0.02
    ppeg_w, ppeg_b = build_ppeg_taps(w7, b7, w5, b5, w3, b3)

    return {
        'fc1_w': fc1_w.astype(BF16),
        'fc1_b': fc1_b,
        'cls_token': cls_token,
        'layer1': layer1,
        'layer2': layer2,
        'ppeg_w': ppeg_w,
        'ppeg_b': ppeg_b,
        'ln_g': jnp.ones((1, DIM), F32),
        'ln_b': jnp.zeros((1, DIM), F32),
        'fc2_w': _normal(nk(), (DIM, n_classes)),
        'fc2_b': _normal(nk(), (1, n_classes)),
    }


# ----------------------------- full forward (glue) -----------------------------

def transmil_forward(x_path, params, n_classes):
    h = fc1_call(x_path, params['fc1_w'], params['fc1_b'])           # [N, 512]
    N = h.shape[0]
    Hs = Ws = int(math.ceil(math.sqrt(N)))
    add_length = Hs * Ws - N
    if add_length > 0:
        h = jnp.concatenate([h, h[:add_length]], axis=0)             # duplicate-pad to square
    h = jnp.concatenate([params['cls_token'], h], axis=0)            # prepend cls -> [1+Hs*Ws, 512]

    h = trans_layer_call(h, params['layer1'])                        # TransLayer 1
    feat = ppeg_call(h[1:], params['ppeg_w'], params['ppeg_b'], Hs, Ws)
    h = jnp.concatenate([h[:1], feat], axis=0)
    h = trans_layer_call(h, params['layer2'])                        # TransLayer 2

    logits = head_call(h[:1], params['ln_g'], params['ln_b'],
                       params['fc2_w'], params['fc2_b'], n_classes)  # [1, n_classes]
    return logits


if __name__ == "__main__":
    n_classes = 4
    N = 6                                        # number of patch features (small test)

    root = jax.random.PRNGKey(0)
    kx, kp = jax.random.split(root)
    x_path = jax.random.normal(kx, (N, IN_DIM), dtype=F32)           # kwargs['x_path']
    params = init_params(kp, n_classes)

    logits = transmil_forward(x_path, params, n_classes)
    logits = jax.block_until_ready(logits)

    # results_dict extras (plain JAX glue, mirrors F.softmax / argmax)
    y_prob = jax.nn.softmax(logits, axis=1)
    y_hat = jnp.argmax(logits, axis=1)
    jax.block_until_ready((y_prob, y_hat))

    print("KERNEL_OK")
</pallas_src>

<mosaic_0001>
module attributes {stable_mosaic.version = 11 : i64} {
  func.func @_fc1_kernel(%arg0: i32, %arg1: memref<8x1024xf32, #tpu.memory_space<vmem>>, %arg2: memref<1024x512xbf16, #tpu.memory_space<vmem>>, %arg3: memref<1x512xf32, #tpu.memory_space<vmem>>, %arg4: memref<8x512xf32, #tpu.memory_space<vmem>>) attributes {dimension_semantics = [#tpu.dimension_semantics<parallel>], iteration_bounds = array<i64: 1>, scalar_prefetch = 0 : i64, scratch_operands = 0 : i64, tpu.core_type = #tpu.core_type<tc>, window_params = [{transform_indices = @transform_0, window_bounds = array<i64: 8, 1024>}, {pipeline_mode = #tpu.pipeline_mode<synchronous>, transform_indices = @transform_1, window_bounds = array<i64: 1024, 512>}, {pipeline_mode = #tpu.pipeline_mode<synchronous>, transform_indices = @transform_2, window_bounds = array<i64: 1, 512>}, {transform_indices = @transform_3, window_bounds = array<i64: 8, 512>}]} {
    %c0 = arith.constant 0 : index
    %c0_0 = arith.constant 0 : index
    %0 = vector.load %arg1[%c0, %c0_0] : memref<8x1024xf32, #tpu.memory_space<vmem>>, vector<8x1024xf32>
    %1 = arith.truncf %0 : vector<8x1024xf32> to vector<8x1024xbf16>
    %c0_1 = arith.constant 0 : index
    %c0_2 = arith.constant 0 : index
    %2 = vector.load %arg2[%c0_1, %c0_2] : memref<1024x512xbf16, #tpu.memory_space<vmem>>, vector<1024x512xbf16>
    %cst = arith.constant dense<0.000000e+00> : vector<8x512xf32>
    %3 = tpu.matmul %1, %2, %cst {dimension_numbers = #tpu.dot_dimension_numbers<[1], [0], [0], [1], [0, 0, 1, 1], [], []>} : vector<8x1024xbf16>, vector<1024x512xbf16>, vector<8x512xf32> -> vector<8x512xf32>
    %c0_3 = arith.constant 0 : index
    %c0_4 = arith.constant 0 : index
    %4 = vector.load %arg3[%c0_3, %c0_4] : memref<1x512xf32, #tpu.memory_space<vmem>>, vector<1x512xf32>
    %5 = vector.broadcast %4 : vector<1x512xf32> to vector<8x512xf32>
    %6 = arith.addf %3, %5 : vector<8x512xf32>
    %cst_5 = arith.constant 0.000000e+00 : f32
    %7 = vector.broadcast %cst_5 : f32 to vector<8x512xf32>
    %8 = arith.maximumf %6, %7 : vector<8x512xf32>
    %c0_6 = arith.constant 0 : index
    %c0_7 = arith.constant 0 : index
    %9 = vector.load %arg4[%c0_6, %c0_7] : memref<8x512xf32, #tpu.memory_space<vmem>>, vector<8x512xf32>
    tpu.vector_store %arg4[%c0_6, %c0_7], %8 {strides = array<i32>} : memref<8x512xf32, #tpu.memory_space<vmem>>, vector<8x512xf32>,
    return
  }
  func.func @transform_0(%arg0: i32) -> (i32, i32) {
    %c0_i32 = arith.constant 0 : i32
    %c0_i32_0 = arith.constant 0 : i32
    return %arg0, %c0_i32 : i32, i32
  }
  func.func @transform_1(%arg0: i32) -> (i32, i32) {
    %c0_i32 = arith.constant 0 : i32
    %c0_i32_0 = arith.constant 0 : i32
    %c0_i32_1 = arith.constant 0 : i32
    return %c0_i32, %c0_i32_0 : i32, i32
  }
  func.func @transform_2(%arg0: i32) -> (i32, i32) {
    %c0_i32 = arith.constant 0 : i32
    %c0_i32_0 = arith.constant 0 : i32
    %c0_i32_1 = arith.constant 0 : i32
    return %c0_i32, %c0_i32_0 : i32, i32
  }
  func.func @transform_3(%arg0: i32) -> (i32, i32) {
    %c0_i32 = arith.constant 0 : i32
    %c0_i32_0 = arith.constant 0 : i32
    return %arg0, %c0_i32 : i32, i32
  }
}

</mosaic_0001>

<bundles_post_ra>
// kernel: tpu_custom_call.1
= control target key start
LH: loop header
LB: loop body
LE: loop exit
PB: predicated region body
PF: predicated region fallthrough
CT: control target
= control target key end

     0   :  { %8 = vsyncpa [#allocation3], 0  ;;  %s2780_s0 = inlined_call_operand.hbm [shape: f32[8,1024], index: 0, kind: input, shape index: {}]   ;;  %s2781_s1 = inlined_call_operand.hbm [shape: bf16[1024,512], index: 1, kind: input, shape index: {}]   ;;  %s2782_s2 = inlined_call_operand.hbm [shape: f32[1,512], index: 2, kind: input, shape index: {}]   ;;  %s2783_s3 = inlined_call_operand.hbm [shape: f32[8,512], index: 3, kind: output, shape index: {}]  }
   0x1   :  { %9 = vsyncpa [#allocation6], 0 }
   0x2   :  { %10 = vsyncpa [#allocation4], 0  ;;  %s2710_s12 = smov [#allocation5]  }
   0x3   :  { %s26_s13 = sshll.u32 %s2710_s12, 4  ;;  %s27_s13 = int_to_ptr.vmem [resolvable:$true] %s26_s13 }
   0x4   :  { %s2632_s14 = scalar_lea.vmem %s27_s13, 32768  ;;  %p2637_p1 = scmp.lt.s32.totalorder %s27_s13, %s27_s13 }
   0x5   :  { %p2633_p0 = scmp.ne.s32.totalorder %s27_s13, %s2632_s14  ;;  %p2638_p2 = scmp.lt.s32.totalorder %s2632_s14, %s2632_s14 }
   0x7   :  { %p2639_p3 = por %p2638_p2, %p2637_p1 }
   0x9   :  { %p2640_p4 = pnand %p2639_p3, %p2633_p0 }
   0xb   :  { %2643 = shalt.err (!%p2640_p4)
}
   0xc   :  { %s2711_s15 = smov 256   ;;  %s2712_s16 = smov 16  }
   0xd   :  { %32 = dma.hbm_to_vmem [thread:$0]  %s2781_s1, 32768, %s27_s13, [#allocation6], %s2711_s15, %s2711_s15, %s2712_s16  }
   0xe   :  { %s2713_s19 = smov [#allocation2]   ;;  %s2714_s21 = smov [#allocation7]  }
   0xf   :  { %s17_s20 = sshll.u32 %s2713_s19, 4  ;;  %s39_s22 = sshll.u32 %s2714_s21, 4  ;;  %s18_s20 = int_to_ptr.vmem [resolvable:$true] %s17_s20  ;;  %s40_s22 = int_to_ptr.vmem [resolvable:$true] %s39_s22 }
  0x10   :  { %s2652_s23 = scalar_lea.vmem %s18_s20, 1024  ;;  %p2657_p6 = scmp.lt.s32.totalorder %s18_s20, %s18_s20 }
  0x11   :  { %p2653_p5 = scmp.ne.s32.totalorder %s18_s20, %s2652_s23  ;;  %p2658_p7 = scmp.lt.s32.totalorder %s2652_s23, %s2652_s23 }
  0x13   :  { %p2659_p8 = por %p2658_p7, %p2657_p6 }
  0x15   :  { %p2660_p9 = pnand %p2659_p8, %p2653_p5 }
  0x17   :  { %2663 = shalt.err (!%p2660_p9)
}
  0x18   :  { %20 = dma.hbm_to_vmem [thread:$0]  %s2780_s0, 1024, %s18_s20, [#allocation3]  }
  0x19   :  { %s2672_s26 = scalar_lea.vmem %s40_s22, 64  ;;  %p2677_p11 = scmp.lt.s32.totalorder %s40_s22, %s40_s22 }
  0x1a   :  { %p2673_p10 = scmp.ne.s32.totalorder %s40_s22, %s2672_s26  ;;  %p2678_p12 = scmp.lt.s32.totalorder %s2672_s26, %s2672_s26 }
  0x1c   :  { %p2679_p13 = por %p2678_p12, %p2677_p11 }
  0x1e   :  { %p2680_p0 = pnand %p2679_p13, %p2673_p10 }
  0x20   :  { %2683 = shalt.err (!%p2680_p0)
}
  0x21   :  { %42 = dma.hbm_to_vmem [thread:$0]  %s2782_s2, 64, %s40_s22, [#allocation6]  }
  0x22   :  { %2704 = dma.done.wait [#allocation3], 1024  }
  0x23   :  { %2705 = vsyncadd [#allocation3], 4294966272 }
  0x24   :  { %2706 = dma.done.wait [#allocation6], 32832  }
  0x25   :  { %2707 = vsyncadd [#allocation6], 4294934464  ;;  %v2240_v0 = vld [vmem:[#allocation5 + $0xe4] ss:$16 sps:$4 sm:$0xff]   ;;  %v2244_v2 = vld [vmem:[#allocation5 + $0xe0] ss:$16 sps:$4 sm:$0xff]  }
  0x26   :  { %v2242_v1 = vld [vmem:[#allocation5 + $0x2e4] ss:$16 sps:$4 sm:$0xff]   ;;  %1626 = vmatprep.subr.bf16.mxu0 %v2240_v0  ;;  %v2245_v3 = vld [vmem:[#allocation5 + $0x2e0] ss:$16 sps:$4 sm:$0xff]   ;;  %v53_v46 = vld [vmem:[#allocation2 + $0x8] sm:$0xff]  ;;  %s2715_s0 = smov [#allocation8]  }
  0x27   :  { %1667 = vmatprep.subr.bf16.mxu1 %v2242_v1  ;;  %v2246_v4 = vld [vmem:[#allocation5 + $0xc4] ss:$16 sps:$4 sm:$0xff]   ;;  %1627 = vmatpush1.bf16.msra.mxu0 %v2244_v2  ;;  %v2250_v6 = vld [vmem:[#allocation5 + $0xc0] ss:$16 sps:$4 sm:$0xff]   ;;  %v2745_v49 = vpack.c.bf16 %v53_v46, %v53_v46  ;;  %v55_v50 = vld [vmem:[#allocation2 + $0x18] sm:$0xff]  ;;  %s1968_s2 = sshll.u32 %s2715_s0, 4  ;;  %s1969_s2 = int_to_ptr.vmem [resolvable:$true] %s1968_s2 }
  0x28   :  { %1668 = vmatpush1.bf16.msra.mxu1 %v2245_v3  ;;  %v2248_v5 = vld [vmem:[#allocation5 + $0x2c4] ss:$16 sps:$4 sm:$0xff]   ;;  %1628 = vmatprep.subr.bf16.mxu0 %v2246_v4  ;;  %v2251_v7 = vld [vmem:[#allocation5 + $0x2c0] ss:$16 sps:$4 sm:$0xff]   ;;  %v2747_v52 = vpack.c.bf16 %v55_v50, %v55_v50  ;;  %s2684_s28 = scalar_lea.vmem %s1969_s2, 512  ;;  %p2689_p2 = scmp.lt.s32.totalorder %s1969_s2, %s1969_s2 }
  0x29   :  { %1669 = vmatprep.subr.bf16.mxu1 %v2248_v5  ;;  %v2252_v8 = vld [vmem:[#allocation5 + $0xa4] ss:$16 sps:$4 sm:$0xff]   ;;  %v2256_v10 = vld [vmem:[#allocation5 + $0xa0] ss:$16 sps:$4 sm:$0xff]   ;;  %1658 = vmatprep.mubr.bf16.mxu0 %v2745_v49  ;;  %p2685_p1 = scmp.ne.s32.totalorder %s1969_s2, %s2684_s28  ;;  %p2690_p3 = scmp.lt.s32.totalorder %s2684_s28, %s2684_s28 }
  0x2a   :  { %v2254_v9 = vld [vmem:[#allocation5 + $0x2a4] ss:$16 sps:$4 sm:$0xff]   ;;  %v2257_v11 = vld [vmem:[#allocation5 + $0x2a0] ss:$16 sps:$4 sm:$0xff]   ;;  %1699 = vmatprep.mubr.bf16.mxu1 %v2747_v52 }
  0x2b   :  { %1629 = vmatpush1.bf16.msra.mxu0 %v2250_v6  ;;  %v2258_v12 = vld [vmem:[#allocation5 + $0x84] ss:$16 sps:$4 sm:$0xff]   ;;  %v2262_v14 = vld [vmem:[#allocation5 + $0x80] ss:$16 sps:$4 sm:$0xff]   ;;  %p2691_p4 = por %p2690_p3, %p2689_p2 }
  0x2c   :  { %1670 = vmatpush1.bf16.msra.mxu1 %v2251_v7  ;;  %1630 = vmatprep.subr.bf16.mxu0 %v2252_v8  ;;  %v2260_v13 = vld [vmem:[#allocation5 + $0x284] ss:$16 sps:$4 sm:$0xff]   ;;  %v2263_v15 = vld [vmem:[#allocation5 + $0x280] ss:$16 sps:$4 sm:$0xff]  }
  0x2d   :  { %1671 = vmatprep.subr.bf16.mxu1 %v2254_v9  ;;  %v2264_v16 = vld [vmem:[#allocation5 + $0x64] ss:$16 sps:$4 sm:$0xff]   ;;  %v2268_v18 = vld [vmem:[#allocation5 + $0x60] ss:$16 sps:$4 sm:$0xff]   ;;  %p2692_p5 = pnand %p2691_p4, %p2685_p1 }
  0x2e   :  { %v2266_v17 = vld [vmem:[#allocation5 + $0x264] ss:$16 sps:$4 sm:$0xff]   ;;  %v2269_v19 = vld [vmem:[#allocation5 + $0x260] ss:$16 sps:$4 sm:$0xff]  }
  0x2f   :  { %1631 = vmatpush1.bf16.msra.mxu0 %v2256_v10  ;;  %v2270_v20 = vld [vmem:[#allocation5 + $0x44] ss:$16 sps:$4 sm:$0xff]   ;;  %v2274_v22 = vld [vmem:[#allocation5 + $0x40] ss:$16 sps:$4 sm:$0xff]  }
  0x30   :  { %1672 = vmatpush1.bf16.msra.mxu1 %v2257_v11  ;;  %1632 = vmatprep.subr.bf16.mxu0 %v2258_v12  ;;  %v2272_v21 = vld [vmem:[#allocation5 + $0x244] ss:$16 sps:$4 sm:$0xff]   ;;  %v2275_v23 = vld [vmem:[#allocation5 + $0x240] ss:$16 sps:$4 sm:$0xff]  }
  0x31   :  { %1673 = vmatprep.subr.bf16.mxu1 %v2260_v13  ;;  %v2276_v24 = vld [vmem:[#allocation5 + $0x24] ss:$16 sps:$4 sm:$0xff]   ;;  %v2280_v26 = vld [vmem:[#allocation5 + $0x20] ss:$16 sps:$4 sm:$0xff]  }
  0x32   :  { %v2278_v25 = vld [vmem:[#allocation5 + $0x224] ss:$16 sps:$4 sm:$0xff]   ;;  %v2281_v27 = vld [vmem:[#allocation5 + $0x220] ss:$16 sps:$4 sm:$0xff]  }
  0x33   :  { %1633 = vmatpush1.bf16.msra.mxu0 %v2262_v14  ;;  %v2282_v28 = vld [vmem:[#allocation5 + $0x4] ss:$16 sps:$4 sm:$0xff]   ;;  %v2286_v30 = vld [vmem:[#allocation5] ss:$16 sps:$4 sm:$0xff]  }
  0x34   :  { %1674 = vmatpush1.bf16.msra.mxu1 %v2263_v15  ;;  %1634 = vmatprep.subr.bf16.mxu0 %v2264_v16  ;;  %v2284_v29 = vld [vmem:[#allocation5 + $0x204] ss:$16 sps:$4 sm:$0xff]   ;;  %v2287_v31 = vld [vmem:[#allocation5 + $0x200] ss:$16 sps:$4 sm:$0xff]  }
  0x35   :  { %1675 = vmatprep.subr.bf16.mxu1 %v2266_v17  ;;  %v2288_v32 = vld [vmem:[#allocation5 + $0x1e4] ss:$16 sps:$4 sm:$0xff]   ;;  %v2292_v34 = vld [vmem:[#allocation5 + $0x1e0] ss:$16 sps:$4 sm:$0xff]  }
  0x36   :  { %v2290_v33 = vld [vmem:[#allocation5 + $0x3e4] ss:$16 sps:$4 sm:$0xff]   ;;  %v2293_v35 = vld [vmem:[#allocation5 + $0x3e0] ss:$16 sps:$4 sm:$0xff]  }
  0x37   :  { %1635 = vmatpush1.bf16.msra.mxu0 %v2268_v18  ;;  %v2294_v36 = vld [vmem:[#allocation5 + $0x1c4] ss:$16 sps:$4 sm:$0xff]   ;;  %v2298_v38 = vld [vmem:[#allocation5 + $0x1c0] ss:$16 sps:$4 sm:$0xff]  }
  0x38   :  { %1676 = vmatpush1.bf16.msra.mxu1 %v2269_v19  ;;  %1636 = vmatprep.subr.bf16.mxu0 %v2270_v20  ;;  %v2296_v37 = vld [vmem:[#allocation5 + $0x3c4] ss:$16 sps:$4 sm:$0xff]   ;;  %v2299_v39 = vld [vmem:[#allocation5 + $0x3c0] ss:$16 sps:$4 sm:$0xff]  }
  0x39   :  { %1677 = vmatprep.subr.bf16.mxu1 %v2272_v21  ;;  %v2300_v40 = vld [vmem:[#allocation5 + $0x1a4] ss:$16 sps:$4 sm:$0xff]   ;;  %v2304_v42 = vld [vmem:[#allocation5 + $0x1a0] ss:$16 sps:$4 sm:$0xff]  }
  0x3a   :  { %v2302_v41 = vld [vmem:[#allocation5 + $0x3a4] ss:$16 sps:$4 sm:$0xff]   ;;  %v2305_v43 = vld [vmem:[#allocation5 + $0x3a0] ss:$16 sps:$4 sm:$0xff]  }
  0x3b   :  { %1637 = vmatpush1.bf16.msra.mxu0 %v2274_v22  ;;  %v2306_v44 = vld [vmem:[#allocation5 + $0x184] ss:$16 sps:$4 sm:$0xff]   ;;  %v2310_v47 = vld [vmem:[#allocation5 + $0x180] ss:$16 sps:$4 sm:$0xff]  }
  0x3c   :  { %1678 = vmatpush1.bf16.msra.mxu1 %v2275_v23  ;;  %1638 = vmatprep.subr.bf16.mxu0 %v2276_v24  ;;  %v2308_v45 = vld [vmem:[#allocation5 + $0x384] ss:$16 sps:$4 sm:$0xff]   ;;  %v2311_v48 = vld [vmem:[#allocation5 + $0x380] ss:$16 sps:$4 sm:$0xff]  }
  0x3d   :  { %1679 = vmatprep.subr.bf16.mxu1 %v2278_v25  ;;  %v2312_v51 = vld [vmem:[#allocation5 + $0x164] ss:$16 sps:$4 sm:$0xff]   ;;  %v2316_v54 = vld [vmem:[#allocation5 + $0x160] ss:$16 sps:$4 sm:$0xff]  }
  0x3e   :  { %v2314_v53 = vld [vmem:[#allocation5 + $0x364] ss:$16 sps:$4 sm:$0xff]   ;;  %v2317_v55 = vld [vmem:[#allocation5 + $0x360] ss:$16 sps:$4 sm:$0xff]  }
  0x3f   :  { %1639 = vmatpush1.bf16.msra.mxu0 %v2280_v26  ;;  %v2318_v56 = vld [vmem:[#allocation5 + $0x144] ss:$16 sps:$4 sm:$0xff]   ;;  %v2322_v58 = vld [vmem:[#allocation5 + $0x140] ss:$16 sps:$4 sm:$0xff]  }
  0x40   :  { %1680 = vmatpush1.bf16.msra.mxu1 %v2281_v27  ;;  %1640 = vmatprep.subr.bf16.mxu0 %v2282_v28  ;;  %v2320_v57 = vld [vmem:[#allocation5 + $0x344] ss:$16 sps:$4 sm:$0xff]   ;;  %v2323_v59 = vld [vmem:[#allocation5 + $0x340] ss:$16 sps:$4 sm:$0xff]  }
  0x41   :  { %1681 = vmatprep.subr.bf16.mxu1 %v2284_v29  ;;  %v2324_v60 = vld [vmem:[#allocation5 + $0x124] ss:$16 sps:$4 sm:$0xff]   ;;  %v2328_v62 = vld [vmem:[#allocation5 + $0x120] ss:$16 sps:$4 sm:$0xff]  }
  0x42   :  { %v2326_v61 = vld [vmem:[#allocation5 + $0x324] ss:$16 sps:$4 sm:$0xff]   ;;  %v2329_v63 = vld [vmem:[#allocation5 + $0x320] ss:$16 sps:$4 sm:$0xff]  }
  0x43   :  { %1641 = vmatpush1.bf16.msra.mxu0 %v2286_v30  ;;  %v2330_v0 = vld [vmem:[#allocation5 + $0x104] ss:$16 sps:$4 sm:$0xff]   ;;  %v2334_v2 = vld [vmem:[#allocation5 + $0x100] ss:$16 sps:$4 sm:$0xff]  }
  0x44   :  { %1682 = vmatpush1.bf16.msra.mxu1 %v2287_v31  ;;  %1642 = vmatprep.subr.bf16.mxu0 %v2288_v32  ;;  %v2332_v1 = vld [vmem:[#allocation5 + $0x304] ss:$16 sps:$4 sm:$0xff]   ;;  %v2335_v3 = vld [vmem:[#allocation5 + $0x300] ss:$16 sps:$4 sm:$0xff]  }
  0x45   :  { %1683 = vmatprep.subr.bf16.mxu1 %v2290_v33  ;;  %v52_v4 = vld [vmem:[#allocation2] sm:$0xff]  ;;  %v54_v5 = vld [vmem:[#allocation2 + $0x10] sm:$0xff] }
  0x46   :  { %v2338_v6 = vld [vmem:[#allocation5 + $0x4e4] ss:$16 sps:$4 sm:$0xff]   ;;  %v2751_v8 = vpack.c.bf16 %v52_v4, %v52_v4  ;;  %v2753_v9 = vpack.c.bf16 %v54_v5, %v54_v5  ;;  %v2336_v10 = vld [vmem:[#allocation5 + $0x4e0] ss:$16 sps:$4 sm:$0xff]  }
  0x47   :  { %1643 = vmatpush2.bf16.msra.mxu0 %v2292_v34  ;;  %v2341_v7 = vld [vmem:[#allocation5 + $0x6e4] ss:$16 sps:$4 sm:$0xff]   ;;  %v2339_v11 = vld [vmem:[#allocation5 + $0x6e0] ss:$16 sps:$4 sm:$0xff]   ;;  %v57_v34 = vld [vmem:[#allocation2 + $0x28] sm:$0xff] }
  0x48   :  { %1684 = vmatpush2.bf16.msra.mxu1 %v2293_v35  ;;  %1644 = vmatprep.subr.bf16.mxu0 %v2294_v36  ;;  %v2344_v12 = vld [vmem:[#allocation5 + $0x4c4] ss:$16 sps:$4 sm:$0xff]   ;;  %v2342_v14 = vld [vmem:[#allocation5 + $0x4c0] ss:$16 sps:$4 sm:$0xff]  }
  0x49   :  { %1685 = vmatprep.subr.bf16.mxu1 %v2296_v37  ;;  %v2347_v13 = vld [vmem:[#allocation5 + $0x6c4] ss:$16 sps:$4 sm:$0xff]   ;;  %v2345_v15 = vld [vmem:[#allocation5 + $0x6c0] ss:$16 sps:$4 sm:$0xff]   ;;  %v2757_v37 = vpack.c.bf16 %v57_v34, %v57_v34  ;;  %v2450_v34 = vld [vmem:[#allocation5 + $0x88] ss:$16 sps:$4 sm:$0xff]  }
  0x4a   :  { %v2350_v16 = vld [vmem:[#allocation5 + $0x4a4] ss:$16 sps:$4 sm:$0xff]   ;;  %v2348_v18 = vld [vmem:[#allocation5 + $0x4a0] ss:$16 sps:$4 sm:$0xff]  }
  0x4b   :  { %1645 = vmatpush2.bf16.msra.mxu0 %v2298_v38  ;;  %v2353_v17 = vld [vmem:[#allocation5 + $0x6a4] ss:$16 sps:$4 sm:$0xff]   ;;  %v2351_v19 = vld [vmem:[#allocation5 + $0x6a0] ss:$16 sps:$4 sm:$0xff]   ;;  %v59_v38 = vld [vmem:[#allocation2 + $0x38] sm:$0xff] }
  0x4c   :  { %1686 = vmatpush2.bf16.msra.mxu1 %v2299_v39  ;;  %1646 = vmatprep.subr.bf16.mxu0 %v2300_v40  ;;  %v2356_v20 = vld [vmem:[#allocation5 + $0x484] ss:$16 sps:$4 sm:$0xff]   ;;  %v2354_v22 = vld [vmem:[#allocation5 + $0x480] ss:$16 sps:$4 sm:$0xff]   ;;  %v2759_v40 = vpack.c.bf16 %v59_v38, %v59_v38  ;;  %v2461_v38 = vld [vmem:[#allocation5 + $0x26c] ss:$16 sps:$4 sm:$0xff]  }
  0x4d   :  { %1687 = vmatprep.subr.bf16.mxu1 %v2302_v41  ;;  %v2359_v21 = vld [vmem:[#allocation5 + $0x684] ss:$16 sps:$4 sm:$0xff]   ;;  %v2357_v23 = vld [vmem:[#allocation5 + $0x680] ss:$16 sps:$4 sm:$0xff]  }
  0x4e   :  { %v2362_v24 = vld [vmem:[#allocation5 + $0x464] ss:$16 sps:$4 sm:$0xff]   ;;  %v2360_v26 = vld [vmem:[#allocation5 + $0x460] ss:$16 sps:$4 sm:$0xff]  }
  0x4f   :  { %1647 = vmatpush2.bf16.msra.mxu0 %v2304_v42  ;;  %v2365_v25 = vld [vmem:[#allocation5 + $0x664] ss:$16 sps:$4 sm:$0xff]   ;;  %v2363_v27 = vld [vmem:[#allocation5 + $0x660] ss:$16 sps:$4 sm:$0xff]  }
  0x50   :  { %1688 = vmatpush2.bf16.msra.mxu1 %v2305_v43  ;;  %1648 = vmatprep.subr.bf16.mxu0 %v2306_v44  ;;  %v2368_v28 = vld [vmem:[#allocation5 + $0x444] ss:$16 sps:$4 sm:$0xff]   ;;  %v2366_v30 = vld [vmem:[#allocation5 + $0x440] ss:$16 sps:$4 sm:$0xff]  }
  0x51   :  { %1689 = vmatprep.subr.bf16.mxu1 %v2308_v45  ;;  %v2371_v29 = vld [vmem:[#allocation5 + $0x644] ss:$16 sps:$4 sm:$0xff]   ;;  %v2369_v31 = vld [vmem:[#allocation5 + $0x640] ss:$16 sps:$4 sm:$0xff]  }
  0x52   :  { %v2374_v32 = vld [vmem:[#allocation5 + $0x424] ss:$16 sps:$4 sm:$0xff]   ;;  %v2372_v35 = vld [vmem:[#allocation5 + $0x420] ss:$16 sps:$4 sm:$0xff]  }
  0x53   :  { %1649 = vmatpush2.bf16.msra.mxu0 %v2310_v47  ;;  %v2377_v33 = vld [vmem:[#allocation5 + $0x624] ss:$16 sps:$4 sm:$0xff]   ;;  %v2375_v36 = vld [vmem:[#allocation5 + $0x620] ss:$16 sps:$4 sm:$0xff]  }
  0x54   :  { %1690 = vmatpush2.bf16.msra.mxu1 %v2311_v48  ;;  %1650 = vmatprep.subr.bf16.mxu0 %v2312_v51  ;;  %v2380_v39 = vld [vmem:[#allocation5 + $0x404] ss:$16 sps:$4 sm:$0xff]   ;;  %v2378_v42 = vld [vmem:[#allocation5 + $0x400] ss:$16 sps:$4 sm:$0xff]  }
  0x55   :  { %1691 = vmatprep.subr.bf16.mxu1 %v2314_v53  ;;  %v2383_v41 = vld [vmem:[#allocation5 + $0x604] ss:$16 sps:$4 sm:$0xff]   ;;  %v2381_v43 = vld [vmem:[#allocation5 + $0x600] ss:$16 sps:$4 sm:$0xff]  }
  0x56   :  { %v2386_v44 = vld [vmem:[#allocation5 + $0x5e4] ss:$16 sps:$4 sm:$0xff]   ;;  %v2384_v46 = vld [vmem:[#allocation5 + $0x5e0] ss:$16 sps:$4 sm:$0xff]  }
  0x57   :  { %1651 = vmatpush2.bf16.msra.mxu0 %v2316_v54  ;;  %v2389_v45 = vld [vmem:[#allocation5 + $0x7e4] ss:$16 sps:$4 sm:$0xff]   ;;  %v2387_v47 = vld [vmem:[#allocation5 + $0x7e0] ss:$16 sps:$4 sm:$0xff]  }
  0x58   :  { %1692 = vmatpush2.bf16.msra.mxu1 %v2317_v55  ;;  %1652 = vmatprep.subr.bf16.mxu0 %v2318_v56  ;;  %v2392_v48 = vld [vmem:[#allocation5 + $0x5c4] ss:$16 sps:$4 sm:$0xff]   ;;  %v2390_v51 = vld [vmem:[#allocation5 + $0x5c0] ss:$16 sps:$4 sm:$0xff]  }
  0x59   :  { %1693 = vmatprep.subr.bf16.mxu1 %v2320_v57  ;;  %v2395_v50 = vld [vmem:[#allocation5 + $0x7c4] ss:$16 sps:$4 sm:$0xff]   ;;  %v2393_v53 = vld [vmem:[#allocation5 + $0x7c0] ss:$16 sps:$4 sm:$0xff]  }
  0x5a   :  { %v2398_v54 = vld [vmem:[#allocation5 + $0x5a4] ss:$16 sps:$4 sm:$0xff]   ;;  %v2396_v56 = vld [vmem:[#allocation5 + $0x5a0] ss:$16 sps:$4 sm:$0xff]  }
  0x5b   :  { %1653 = vmatpush2.bf16.msra.mxu0 %v2322_v58  ;;  %v2401_v55 = vld [vmem:[#allocation5 + $0x7a4] ss:$16 sps:$4 sm:$0xff]   ;;  %v2399_v57 = vld [vmem:[#allocation5 + $0x7a0] ss:$16 sps:$4 sm:$0xff]  }
  0x5c   :  { %1694 = vmatpush2.bf16.msra.mxu1 %v2323_v59  ;;  %1654 = vmatprep.subr.bf16.mxu0 %v2324_v60  ;;  %v2404_v58 = vld [vmem:[#allocation5 + $0x584] ss:$16 sps:$4 sm:$0xff]   ;;  %v2402_v60 = vld [vmem:[#allocation5 + $0x580] ss:$16 sps:$4 sm:$0xff]  }
  0x5d   :  { %1695 = vmatprep.subr.bf16.mxu1 %v2326_v61  ;;  %v2407_v59 = vld [vmem:[#allocation5 + $0x784] ss:$16 sps:$4 sm:$0xff]   ;;  %v2405_v61 = vld [vmem:[#allocation5 + $0x780] ss:$16 sps:$4 sm:$0xff]  }
  0x5e   :  { %v2414_v4 = vld [vmem:[#allocation5 + $0x540] ss:$16 sps:$4 sm:$0xff]  }
  0x5f   :  { %1655 = vmatpush2.bf16.msra.mxu0 %v2328_v62  ;;  %v2410_v62 = vld [vmem:[#allocation5 + $0x564] ss:$16 sps:$4 sm:$0xff]   ;;  %v2417_v5 = vld [vmem:[#allocation5 + $0x740] ss:$16 sps:$4 sm:$0xff]  }
  0x60   :  { %1696 = vmatpush2.bf16.msra.mxu1 %v2329_v63  ;;  %1656 = vmatprep.subr.bf16.mxu0 %v2330_v0  ;;  %v2413_v63 = vld [vmem:[#allocation5 + $0x764] ss:$16 sps:$4 sm:$0xff]   ;;  %v2408_v0 = vld [vmem:[#allocation5 + $0x560] ss:$16 sps:$4 sm:$0xff]  }
  0x61   :  { %1697 = vmatprep.subr.bf16.mxu1 %v2332_v1  ;;  %v2411_v1 = vld [vmem:[#allocation5 + $0x760] ss:$16 sps:$4 sm:$0xff]  }
  0x63   :  { %1657 = vmatpush2.bf16.msra.mxu0 %v2334_v2  ;;  %v2416_v2 = vld [vmem:[#allocation5 + $0x544] ss:$16 sps:$4 sm:$0xff]  }
  0x64   :  { %1698 = vmatpush2.bf16.msra.mxu1 %v2335_v3  ;;  %1708 = vmatprep.subr.bf16.mxu0 %v2338_v6  ;;  %v2419_v3 = vld [vmem:[#allocation5 + $0x744] ss:$16 sps:$4 sm:$0xff]  }
  0x65   :  { %1749 = vmatprep.subr.bf16.mxu1 %v2341_v7  ;;  %v2422_v6 = vld [vmem:[#allocation5 + $0x524] ss:$16 sps:$4 sm:$0xff]  }
  0x66   :  { %1659 = vmatmul.mubr.bf16.vlgmr.msra.gmra.mxu0 %v2751_v8  ;;  %v2425_v7 = vld [vmem:[#allocation5 + $0x724] ss:$16 sps:$4 sm:$0xff]  }
  0x67   :  { %1700 = vmatmul.mubr.bf16.vlgmr.msra.gmra.mxu1 %v2753_v9  ;;  %1709 = vmatpush1.bf16.msra.mxu0 %v2336_v10  ;;  %v2420_v10 = vld [vmem:[#allocation5 + $0x520] ss:$16 sps:$4 sm:$0xff]  }
  0x68   :  { %1750 = vmatpush1.bf16.msra.mxu1 %v2339_v11  ;;  %1710 = vmatprep.subr.bf16.mxu0 %v2344_v12  ;;  %v2423_v11 = vld [vmem:[#allocation5 + $0x720] ss:$16 sps:$4 sm:$0xff]   ;;  %v2428_v12 = vld [vmem:[#allocation5 + $0x504] ss:$16 sps:$4 sm:$0xff]  }
  0x69   :  { %1751 = vmatprep.subr.bf16.mxu1 %v2347_v13  ;;  %1740 = vmatprep.mubr.bf16.mxu0 %v2757_v37  ;;  %v2431_v13 = vld [vmem:[#allocation5 + $0x704] ss:$16 sps:$4 sm:$0xff]  }
  0x6a   :  { %1781 = vmatprep.mubr.bf16.mxu1 %v2759_v40 }
  0x6b   :  { %1711 = vmatpush1.bf16.msra.mxu0 %v2342_v14  ;;  %v2426_v14 = vld [vmem:[#allocation5 + $0x500] ss:$16 sps:$4 sm:$0xff]  }
  0x6c   :  { %1752 = vmatpush1.bf16.msra.mxu1 %v2345_v15  ;;  %1712 = vmatprep.subr.bf16.mxu0 %v2350_v16  ;;  %v2429_v15 = vld [vmem:[#allocation5 + $0x700] ss:$16 sps:$4 sm:$0xff]  }
  0x6d   :  { %1753 = vmatprep.subr.bf16.mxu1 %v2353_v17  ;;  %v56_v16 = vld [vmem:[#allocation2 + $0x20] sm:$0xff]  ;;  %v58_v17 = vld [vmem:[#allocation2 + $0x30] sm:$0xff] }
  0x6f   :  { %1713 = vmatpush1.bf16.msra.mxu0 %v2348_v18  ;;  %v2434_v18 = vld [vmem:[#allocation5 + $0xec] ss:$16 sps:$4 sm:$0xff]  }
  0x70   :  { %1754 = vmatpush1.bf16.msra.mxu1 %v2351_v19  ;;  %1714 = vmatprep.subr.bf16.mxu0 %v2356_v20  ;;  %v2437_v19 = vld [vmem:[#allocation5 + $0x2ec] ss:$16 sps:$4 sm:$0xff]   ;;  %v2763_v20 = vpack.c.bf16 %v56_v16, %v56_v16 }
  0x71   :  { %1755 = vmatprep.subr.bf16.mxu1 %v2359_v21  ;;  %v2765_v21 = vpack.c.bf16 %v58_v17, %v58_v17  ;;  %v2518_v16 = vld [vmem:[#allocation5 + $0x12c] ss:$16 sps:$4 sm:$0xff]  }
  0x72   :  { %v2521_v17 = vld [vmem:[#allocation5 + $0x32c] ss:$16 sps:$4 sm:$0xff]  }
  0x73   :  { %1715 = vmatpush1.bf16.msra.mxu0 %v2354_v22  ;;  %v2432_v22 = vld [vmem:[#allocation5 + $0xe8] ss:$16 sps:$4 sm:$0xff]  }
  0x74   :  { %1756 = vmatpush1.bf16.msra.mxu1 %v2357_v23  ;;  %1716 = vmatprep.subr.bf16.mxu0 %v2362_v24  ;;  %v2435_v23 = vld [vmem:[#allocation5 + $0x2e8] ss:$16 sps:$4 sm:$0xff]   ;;  %v2440_v24 = vld [vmem:[#allocation5 + $0xcc] ss:$16 sps:$4 sm:$0xff]  }
  0x75   :  { %1757 = vmatprep.subr.bf16.mxu1 %v2365_v25  ;;  %v2443_v25 = vld [vmem:[#allocation5 + $0x2cc] ss:$16 sps:$4 sm:$0xff]  }
  0x77   :  { %1717 = vmatpush1.bf16.msra.mxu0 %v2360_v26  ;;  %v2438_v26 = vld [vmem:[#allocation5 + $0xc8] ss:$16 sps:$4 sm:$0xff]  }
  0x78   :  { %1758 = vmatpush1.bf16.msra.mxu1 %v2363_v27  ;;  %1718 = vmatprep.subr.bf16.mxu0 %v2368_v28  ;;  %v2441_v27 = vld [vmem:[#allocation5 + $0x2c8] ss:$16 sps:$4 sm:$0xff]   ;;  %v2446_v28 = vld [vmem:[#allocation5 + $0xac] ss:$16 sps:$4 sm:$0xff]  }
  0x79   :  { %1759 = vmatprep.subr.bf16.mxu1 %v2371_v29  ;;  %v2449_v29 = vld [vmem:[#allocation5 + $0x2ac] ss:$16 sps:$4 sm:$0xff]  }
  0x7b   :  { %1719 = vmatpush1.bf16.msra.mxu0 %v2366_v30  ;;  %v2444_v30 = vld [vmem:[#allocation5 + $0xa8] ss:$16 sps:$4 sm:$0xff]  }
  0x7c   :  { %1760 = vmatpush1.bf16.msra.mxu1 %v2369_v31  ;;  %1720 = vmatprep.subr.bf16.mxu0 %v2374_v32  ;;  %v2447_v31 = vld [vmem:[#allocation5 + $0x2a8] ss:$16 sps:$4 sm:$0xff]   ;;  %v2452_v32 = vld [vmem:[#allocation5 + $0x8c] ss:$16 sps:$4 sm:$0xff]  }
  0x7d   :  { %1761 = vmatprep.subr.bf16.mxu1 %v2377_v33  ;;  %v2455_v33 = vld [vmem:[#allocation5 + $0x28c] ss:$16 sps:$4 sm:$0xff]  }
  0x7f   :  { %1721 = vmatpush1.bf16.msra.mxu0 %v2372_v35  ;;  %v2453_v35 = vld [vmem:[#allocation5 + $0x288] ss:$16 sps:$4 sm:$0xff]  }
  0x80   :  { %1762 = vmatpush1.bf16.msra.mxu1 %v2375_v36  ;;  %1722 = vmatprep.subr.bf16.mxu0 %v2380_v39  ;;  %v2458_v36 = vld [vmem:[#allocation5 + $0x6c] ss:$16 sps:$4 sm:$0xff]   ;;  %v2456_v39 = vld [vmem:[#allocation5 + $0x68] ss:$16 sps:$4 sm:$0xff]  }
  0x81   :  { %1763 = vmatprep.subr.bf16.mxu1 %v2383_v41  ;;  %v2467_v41 = vld [vmem:[#allocation5 + $0x24c] ss:$16 sps:$4 sm:$0xff]  }
  0x83   :  { %1723 = vmatpush1.bf16.msra.mxu0 %v2378_v42  ;;  %v2462_v42 = vld [vmem:[#allocation5 + $0x48] ss:$16 sps:$4 sm:$0xff]  }
  0x84   :  { %1764 = vmatpush1.bf16.msra.mxu1 %v2381_v43  ;;  %1724 = vmatprep.subr.bf16.mxu0 %v2386_v44  ;;  %v2465_v43 = vld [vmem:[#allocation5 + $0x248] ss:$16 sps:$4 sm:$0xff]   ;;  %v2470_v44 = vld [vmem:[#allocation5 + $0x2c] ss:$16 sps:$4 sm:$0xff]  }
  0x85   :  { %1765 = vmatprep.subr.bf16.mxu1 %v2389_v45  ;;  %v2473_v45 = vld [vmem:[#allocation5 + $0x22c] ss:$16 sps:$4 sm:$0xff]  }
  0x87   :  { %1725 = vmatpush2.bf16.msra.mxu0 %v2384_v46  ;;  %v2468_v46 = vld [vmem:[#allocation5 + $0x28] ss:$16 sps:$4 sm:$0xff]  }
  0x88   :  { %1766 = vmatpush2.bf16.msra.mxu1 %v2387_v47  ;;  %1726 = vmatprep.subr.bf16.mxu0 %v2392_v48  ;;  %v2471_v47 = vld [vmem:[#allocation5 + $0x228] ss:$16 sps:$4 sm:$0xff]   ;;  %v2476_v48 = vld [vmem:[#allocation5 + $0xc] ss:$16 sps:$4 sm:$0xff]  }
  0x89   :  { %1767 = vmatprep.subr.bf16.mxu1 %v2395_v50  ;;  %v2479_v50 = vld [vmem:[#allocation5 + $0x20c] ss:$16 sps:$4 sm:$0xff]  }
  0x8b   :  { %1727 = vmatpush2.bf16.msra.mxu0 %v2390_v51  ;;  %v2474_v51 = vld [vmem:[#allocation5 + $0x8] ss:$16 sps:$4 sm:$0xff]  }
  0x8c   :  { %1768 = vmatpush2.bf16.msra.mxu1 %v2393_v53  ;;  %1728 = vmatprep.subr.bf16.mxu0 %v2398_v54  ;;  %v2477_v53 = vld [vmem:[#allocation5 + $0x208] ss:$16 sps:$4 sm:$0xff]   ;;  %v2482_v54 = vld [vmem:[#allocation5 + $0x1ec] ss:$16 sps:$4 sm:$0xff]  }
  0x8d   :  { %1769 = vmatprep.subr.bf16.mxu1 %v2401_v55  ;;  %v2485_v55 = vld [vmem:[#allocation5 + $0x3ec] ss:$16 sps:$4 sm:$0xff]  }
  0x8f   :  { %1729 = vmatpush2.bf16.msra.mxu0 %v2396_v56  ;;  %v2480_v56 = vld [vmem:[#allocation5 + $0x1e8] ss:$16 sps:$4 sm:$0xff]  }
  0x90   :  { %1770 = vmatpush2.bf16.msra.mxu1 %v2399_v57  ;;  %1730 = vmatprep.subr.bf16.mxu0 %v2404_v58  ;;  %v2483_v57 = vld [vmem:[#allocation5 + $0x3e8] ss:$16 sps:$4 sm:$0xff]   ;;  %v2488_v58 = vld [vmem:[#allocation5 + $0x1cc] ss:$16 sps:$4 sm:$0xff]  }
  0x91   :  { %1771 = vmatprep.subr.bf16.mxu1 %v2407_v59  ;;  %v2491_v59 = vld [vmem:[#allocation5 + $0x3cc] ss:$16 sps:$4 sm:$0xff]  }
  0x93   :  { %1731 = vmatpush2.bf16.msra.mxu0 %v2402_v60  ;;  %v2486_v60 = vld [vmem:[#allocation5 + $0x1c8] ss:$16 sps:$4 sm:$0xff]  }
  0x94   :  { %1772 = vmatpush2.bf16.msra.mxu1 %v2405_v61  ;;  %1732 = vmatprep.subr.bf16.mxu0 %v2410_v62  ;;  %v2489_v61 = vld [vmem:[#allocation5 + $0x3c8] ss:$16 sps:$4 sm:$0xff]   ;;  %v2494_v62 = vld [vmem:[#allocation5 + $0x1ac] ss:$16 sps:$4 sm:$0xff]  }
  0x95   :  { %1773 = vmatprep.subr.bf16.mxu1 %v2413_v63  ;;  %v2497_v63 = vld [vmem:[#allocation5 + $0x3ac] ss:$16 sps:$4 sm:$0xff]  }
  0x97   :  { %1733 = vmatpush2.bf16.msra.mxu0 %v2408_v0  ;;  %v2492_v0 = vld [vmem:[#allocation5 + $0x1a8] ss:$16 sps:$4 sm:$0xff]  }
  0x98   :  { %1774 = vmatpush2.bf16.msra.mxu1 %v2411_v1  ;;  %1734 = vmatprep.subr.bf16.mxu0 %v2416_v2  ;;  %v2495_v1 = vld [vmem:[#allocation5 + $0x3a8] ss:$16 sps:$4 sm:$0xff]   ;;  %v2500_v2 = vld [vmem:[#allocation5 + $0x18c] ss:$16 sps:$4 sm:$0xff]  }
  0x99   :  { %1775 = vmatprep.subr.bf16.mxu1 %v2419_v3  ;;  %v2503_v3 = vld [vmem:[#allocation5 + $0x38c] ss:$16 sps:$4 sm:$0xff]  }
  0x9b   :  { %1735 = vmatpush2.bf16.msra.mxu0 %v2414_v4  ;;  %v2498_v4 = vld [vmem:[#allocation5 + $0x188] ss:$16 sps:$4 sm:$0xff]  }
  0x9c   :  { %1776 = vmatpush2.bf16.msra.mxu1 %v2417_v5  ;;  %1736 = vmatprep.subr.bf16.mxu0 %v2422_v6  ;;  %v2501_v5 = vld [vmem:[#allocation5 + $0x388] ss:$16 sps:$4 sm:$0xff]   ;;  %v2506_v6 = vld [vmem:[#allocation5 + $0x16c] ss:$16 sps:$4 sm:$0xff]  }
  0x9d   :  { %1777 = vmatprep.subr.bf16.mxu1 %v2425_v7  ;;  %v2509_v7 = vld [vmem:[#allocation5 + $0x36c] ss:$16 sps:$4 sm:$0xff]  }
  0x9f   :  { %1737 = vmatpush2.bf16.msra.mxu0 %v2420_v10  ;;  %v2504_v10 = vld [vmem:[#allocation5 + $0x168] ss:$16 sps:$4 sm:$0xff]  }
  0xa0   :  { %1778 = vmatpush2.bf16.msra.mxu1 %v2423_v11  ;;  %1738 = vmatprep.subr.bf16.mxu0 %v2428_v12  ;;  %v2507_v11 = vld [vmem:[#allocation5 + $0x368] ss:$16 sps:$4 sm:$0xff]   ;;  %v2512_v12 = vld [vmem:[#allocation5 + $0x14c] ss:$16 sps:$4 sm:$0xff]  }
  0xa1   :  { %1779 = vmatprep.subr.bf16.mxu1 %v2431_v13  ;;  %v2515_v13 = vld [vmem:[#allocation5 + $0x34c] ss:$16 sps:$4 sm:$0xff]  }
  0xa3   :  { %1739 = vmatpush2.bf16.msra.mxu0 %v2426_v14  ;;  %v2510_v14 = vld [vmem:[#allocation5 + $0x148] ss:$16 sps:$4 sm:$0xff]  }
  0xa4   :  { %1780 = vmatpush2.bf16.msra.mxu1 %v2429_v15  ;;  %1790 = vmatprep.subr.bf16.mxu0 %v2434_v18  ;;  %v2513_v15 = vld [vmem:[#allocation5 + $0x348] ss:$16 sps:$4 sm:$0xff]  }
  0xa5   :  { %1831 = vmatprep.subr.bf16.mxu1 %v2437_v19  ;;  %v2516_v18 = vld [vmem:[#allocation5 + $0x128] ss:$16 sps:$4 sm:$0xff]  }
  0xa6   :  { %1741 = vmatmul.mubr.bf16.vlgmr.msra.gmra.mxu0 %v2763_v20  ;;  %v2519_v19 = vld [vmem:[#allocation5 + $0x328] ss:$16 sps:$4 sm:$0xff]  }
  0xa7   :  { %1782 = vmatmul.mubr.bf16.vlgmr.msra.gmra.mxu1 %v2765_v21  ;;  %1791 = vmatpush1.bf16.msra.mxu0 %v2432_v22  ;;  %v2524_v22 = vld [vmem:[#allocation5 + $0x10c] ss:$16 sps:$4 sm:$0xff]  }
  0xa8   :  { %1832 = vmatpush1.bf16.msra.mxu1 %v2435_v23  ;;  %1792 = vmatprep.subr.bf16.mxu0 %v2440_v24  ;;  %v2527_v23 = vld [vmem:[#allocation5 + $0x30c] ss:$16 sps:$4 sm:$0xff]   ;;  %v2522_v24 = vld [vmem:[#allocation5 + $0x108] ss:$16 sps:$4 sm:$0xff]  }
  0xa9   :  { %1833 = vmatprep.subr.bf16.mxu1 %v2443_v25  ;;  %1822 = vmatprep.mubr.bf16.mxu0 %v2745_v49  ;;  %v2459_v49 = vld [vmem:[#allocation5 + $0x268] ss:$16 sps:$4 sm:$0xff]  }
  0xaa   :  { %1863 = vmatprep.mubr.bf16.mxu1 %v2747_v52  ;;  %v2464_v52 = vld [vmem:[#allocation5 + $0x4c] ss:$16 sps:$4 sm:$0xff]   ;;  %v2525_v25 = vld [vmem:[#allocation5 + $0x308] ss:$16 sps:$4 sm:$0xff]  }
  0xab   :  { %1793 = vmatpush1.bf16.msra.mxu0 %v2438_v26  ;;  %v2530_v26 = vld [vmem:[#allocation5 + $0x4ec] ss:$16 sps:$4 sm:$0xff]  }
  0xac   :  { %1834 = vmatpush1.bf16.msra.mxu1 %v2441_v27  ;;  %1794 = vmatprep.subr.bf16.mxu0 %v2446_v28  ;;  %v2533_v27 = vld [vmem:[#allocation5 + $0x6ec] ss:$16 sps:$4 sm:$0xff]   ;;  %v2528_v28 = vld [vmem:[#allocation5 + $0x4e8] ss:$16 sps:$4 sm:$0xff]  }
  0xad   :  { %1835 = vmatprep.subr.bf16.mxu1 %v2449_v29  ;;  %v2531_v29 = vld [vmem:[#allocation5 + $0x6e8] ss:$16 sps:$4 sm:$0xff]  }
  0xaf   :  { %1795 = vmatpush1.bf16.msra.mxu0 %v2444_v30  ;;  %v2536_v30 = vld [vmem:[#allocation5 + $0x4cc] ss:$16 sps:$4 sm:$0xff]  }
  0xb0   :  { %1836 = vmatpush1.bf16.msra.mxu1 %v2447_v31  ;;  %1796 = vmatprep.subr.bf16.mxu0 %v2452_v32  ;;  %v2539_v31 = vld [vmem:[#allocation5 + $0x6cc] ss:$16 sps:$4 sm:$0xff]   ;;  %v2534_v32 = vld [vmem:[#allocation5 + $0x4c8] ss:$16 sps:$4 sm:$0xff]  }
  0xb1   :  { %1837 = vmatprep.subr.bf16.mxu1 %v2455_v33  ;;  %v2537_v33 = vld [vmem:[#allocation5 + $0x6c8] ss:$16 sps:$4 sm:$0xff]  }
  0xb3   :  { %1797 = vmatpush1.bf16.msra.mxu0 %v2450_v34  ;;  %v2542_v34 = vld [vmem:[#allocation5 + $0x4ac] ss:$16 sps:$4 sm:$0xff]  }
  0xb4   :  { %1838 = vmatpush1.bf16.msra.mxu1 %v2453_v35  ;;  %1798 = vmatprep.subr.bf16.mxu0 %v2458_v36  ;;  %v2545_v35 = vld [vmem:[#allocation5 + $0x6ac] ss:$16 sps:$4 sm:$0xff]   ;;  %v2540_v36 = vld [vmem:[#allocation5 + $0x4a8] ss:$16 sps:$4 sm:$0xff]  }
  0xb5   :  { %1839 = vmatprep.subr.bf16.mxu1 %v2461_v38  ;;  %v2543_v38 = vld [vmem:[#allocation5 + $0x6a8] ss:$16 sps:$4 sm:$0xff]  }
  0xb7   :  { %1799 = vmatpush1.bf16.msra.mxu0 %v2456_v39  ;;  %v2546_v39 = vld [vmem:[#allocation5 + $0x488] ss:$16 sps:$4 sm:$0xff]  }
  0xb8   :  { %1840 = vmatpush1.bf16.msra.mxu1 %v2459_v49  ;;  %1800 = vmatprep.subr.bf16.mxu0 %v2464_v52  ;;  %v2549_v49 = vld [vmem:[#allocation5 + $0x688] ss:$16 sps:$4 sm:$0xff]   ;;  %v2554_v52 = vld [vmem:[#allocation5 + $0x46c] ss:$16 sps:$4 sm:$0xff]  }
  0xb9   :  { %1841 = vmatprep.subr.bf16.mxu1 %v2467_v41  ;;  %v2557_v41 = vld [vmem:[#allocation5 + $0x66c] ss:$16 sps:$4 sm:$0xff]  }
  0xbb   :  { %1801 = vmatpush1.bf16.msra.mxu0 %v2462_v42  ;;  %v2560_v42 = vld [vmem:[#allocation5 + $0x44c] ss:$16 sps:$4 sm:$0xff]  }
  0xbc   :  { %1842 = vmatpush1.bf16.msra.mxu1 %v2465_v43  ;;  %1802 = vmatprep.subr.bf16.mxu0 %v2470_v44  ;;  %v2563_v43 = vld [vmem:[#allocation5 + $0x64c] ss:$16 sps:$4 sm:$0xff]   ;;  %v2558_v44 = vld [vmem:[#allocation5 + $0x448] ss:$16 sps:$4 sm:$0xff]  }
  0xbd   :  { %1843 = vmatprep.subr.bf16.mxu1 %v2473_v45  ;;  %v2561_v45 = vld [vmem:[#allocation5 + $0x648] ss:$16 sps:$4 sm:$0xff]  }
  0xbf   :  { %1803 = vmatpush1.bf16.msra.mxu0 %v2468_v46  ;;  %v2566_v46 = vld [vmem:[#allocation5 + $0x42c] ss:$16 sps:$4 sm:$0xff]  }
  0xc0   :  { %1844 = vmatpush1.bf16.msra.mxu1 %v2471_v47  ;;  %1804 = vmatprep.subr.bf16.mxu0 %v2476_v48  ;;  %v2569_v47 = vld [vmem:[#allocation5 + $0x62c] ss:$16 sps:$4 sm:$0xff]   ;;  %v2564_v48 = vld [vmem:[#allocation5 + $0x428] ss:$16 sps:$4 sm:$0xff]  }
  0xc1   :  { %1845 = vmatprep.subr.bf16.mxu1 %v2479_v50  ;;  %v2567_v50 = vld [vmem:[#allocation5 + $0x628] ss:$16 sps:$4 sm:$0xff]  }
  0xc3   :  { %1805 = vmatpush1.bf16.msra.mxu0 %v2474_v51  ;;  %v2572_v51 = vld [vmem:[#allocation5 + $0x40c] ss:$16 sps:$4 sm:$0xff]  }
  0xc4   :  { %1846 = vmatpush1.bf16.msra.mxu1 %v2477_v53  ;;  %1806 = vmatprep.subr.bf16.mxu0 %v2482_v54  ;;  %v2575_v53 = vld [vmem:[#allocation5 + $0x60c] ss:$16 sps:$4 sm:$0xff]   ;;  %v2570_v54 = vld [vmem:[#allocation5 + $0x408] ss:$16 sps:$4 sm:$0xff]  }
  0xc5   :  { %1847 = vmatprep.subr.bf16.mxu1 %v2485_v55  ;;  %v2573_v55 = vld [vmem:[#allocation5 + $0x608] ss:$16 sps:$4 sm:$0xff]  }
  0xc7   :  { %1807 = vmatpush2.bf16.msra.mxu0 %v2480_v56  ;;  %v2578_v56 = vld [vmem:[#allocation5 + $0x5ec] ss:$16 sps:$4 sm:$0xff]  }
  0xc8   :  { %1848 = vmatpush2.bf16.msra.mxu1 %v2483_v57  ;;  %1808 = vmatprep.subr.bf16.mxu0 %v2488_v58  ;;  %v2581_v57 = vld [vmem:[#allocation5 + $0x7ec] ss:$16 sps:$4 sm:$0xff]   ;;  %v2576_v58 = vld [vmem:[#allocation5 + $0x5e8] ss:$16 sps:$4 sm:$0xff]  }
  0xc9   :  { %1849 = vmatprep.subr.bf16.mxu1 %v2491_v59  ;;  %v2579_v59 = vld [vmem:[#allocation5 + $0x7e8] ss:$16 sps:$4 sm:$0xff]  }
  0xcb   :  { %1809 = vmatpush2.bf16.msra.mxu0 %v2486_v60  ;;  %v2584_v60 = vld [vmem:[#allocation5 + $0x5cc] ss:$16 sps:$4 sm:$0xff]  }
  0xcc   :  { %1850 = vmatpush2.bf16.msra.mxu1 %v2489_v61  ;;  %1810 = vmatprep.subr.bf16.mxu0 %v2494_v62  ;;  %v2587_v61 = vld [vmem:[#allocation5 + $0x7cc] ss:$16 sps:$4 sm:$0xff]   ;;  %v2582_v62 = vld [vmem:[#allocation5 + $0x5c8] ss:$16 sps:$4 sm:$0xff]  }
  0xcd   :  { %1851 = vmatprep.subr.bf16.mxu1 %v2497_v63  ;;  %v2585_v63 = vld [vmem:[#allocation5 + $0x7c8] ss:$16 sps:$4 sm:$0xff]  }
  0xcf   :  { %1811 = vmatpush2.bf16.msra.mxu0 %v2492_v0  ;;  %v2590_v0 = vld [vmem:[#allocation5 + $0x5ac] ss:$16 sps:$4 sm:$0xff]  }
  0xd0   :  { %1852 = vmatpush2.bf16.msra.mxu1 %v2495_v1  ;;  %1812 = vmatprep.subr.bf16.mxu0 %v2500_v2  ;;  %v2593_v1 = vld [vmem:[#allocation5 + $0x7ac] ss:$16 sps:$4 sm:$0xff]   ;;  %v2588_v2 = vld [vmem:[#allocation5 + $0x5a8] ss:$16 sps:$4 sm:$0xff]  }
  0xd1   :  { %1853 = vmatprep.subr.bf16.mxu1 %v2503_v3  ;;  %v2591_v3 = vld [vmem:[#allocation5 + $0x7a8] ss:$16 sps:$4 sm:$0xff]  }
  0xd3   :  { %1813 = vmatpush2.bf16.msra.mxu0 %v2498_v4  ;;  %v2596_v4 = vld [vmem:[#allocation5 + $0x58c] ss:$16 sps:$4 sm:$0xff]  }
  0xd4   :  { %1854 = vmatpush2.bf16.msra.mxu1 %v2501_v5  ;;  %1814 = vmatprep.subr.bf16.mxu0 %v2506_v6  ;;  %v2599_v5 = vld [vmem:[#allocation5 + $0x78c] ss:$16 sps:$4 sm:$0xff]   ;;  %v2594_v6 = vld [vmem:[#allocation5 + $0x588] ss:$16 sps:$4 sm:$0xff]  }
  0xd5   :  { %1855 = vmatprep.subr.bf16.mxu1 %v2509_v7  ;;  %v2597_v7 = vld [vmem:[#allocation5 + $0x788] ss:$16 sps:$4 sm:$0xff]  }
  0xd7   :  { %1815 = vmatpush2.bf16.msra.mxu0 %v2504_v10  ;;  %v2602_v10 = vld [vmem:[#allocation5 + $0x56c] ss:$16 sps:$4 sm:$0xff]  }
  0xd8   :  { %1856 = vmatpush2.bf16.msra.mxu1 %v2507_v11  ;;  %1816 = vmatprep.subr.bf16.mxu0 %v2512_v12  ;;  %v2605_v11 = vld [vmem:[#allocation5 + $0x76c] ss:$16 sps:$4 sm:$0xff]   ;;  %v2600_v12 = vld [vmem:[#allocation5 + $0x568] ss:$16 sps:$4 sm:$0xff]  }
  0xd9   :  { %1857 = vmatprep.subr.bf16.mxu1 %v2515_v13  ;;  %v2603_v13 = vld [vmem:[#allocation5 + $0x768] ss:$16 sps:$4 sm:$0xff]  }
  0xdb   :  { %1817 = vmatpush2.bf16.msra.mxu0 %v2510_v14  ;;  %v2608_v14 = vld [vmem:[#allocation5 + $0x54c] ss:$16 sps:$4 sm:$0xff]  }
  0xdc   :  { %1858 = vmatpush2.bf16.msra.mxu1 %v2513_v15  ;;  %1818 = vmatprep.subr.bf16.mxu0 %v2518_v16  ;;  %v2611_v15 = vld [vmem:[#allocation5 + $0x74c] ss:$16 sps:$4 sm:$0xff]   ;;  %v2606_v16 = vld [vmem:[#allocation5 + $0x548] ss:$16 sps:$4 sm:$0xff]  }
  0xdd   :  { %1859 = vmatprep.subr.bf16.mxu1 %v2521_v17  ;;  %v2609_v17 = vld [vmem:[#allocation5 + $0x748] ss:$16 sps:$4 sm:$0xff]  }
  0xdf   :  { %1819 = vmatpush2.bf16.msra.mxu0 %v2516_v18  ;;  %v2614_v18 = vld [vmem:[#allocation5 + $0x52c] ss:$16 sps:$4 sm:$0xff]  }
  0xe0   :  { %1860 = vmatpush2.bf16.msra.mxu1 %v2519_v19  ;;  %1820 = vmatprep.subr.bf16.mxu0 %v2524_v22  ;;  %v2617_v19 = vld [vmem:[#allocation5 + $0x72c] ss:$16 sps:$4 sm:$0xff]   ;;  %v2612_v22 = vld [vmem:[#allocation5 + $0x528] ss:$16 sps:$4 sm:$0xff]  }
  0xe1   :  { %1861 = vmatprep.subr.bf16.mxu1 %v2527_v23  ;;  %v2615_v23 = vld [vmem:[#allocation5 + $0x728] ss:$16 sps:$4 sm:$0xff]  }
  0xe3   :  { %1821 = vmatpush2.bf16.msra.mxu0 %v2522_v24  ;;  %v2620_v24 = vld [vmem:[#allocation5 + $0x50c] ss:$16 sps:$4 sm:$0xff]  }
  0xe4   :  { %1862 = vmatpush2.bf16.msra.mxu1 %v2525_v25  ;;  %1872 = vmatprep.subr.bf16.mxu0 %v2530_v26  ;;  %v2623_v25 = vld [vmem:[#allocation5 + $0x70c] ss:$16 sps:$4 sm:$0xff]   ;;  %v2618_v26 = vld [vmem:[#allocation5 + $0x508] ss:$16 sps:$4 sm:$0xff]  }
  0xe5   :  { %1913 = vmatprep.subr.bf16.mxu1 %v2533_v27  ;;  %v2621_v27 = vld [vmem:[#allocation5 + $0x708] ss:$16 sps:$4 sm:$0xff]  }
  0xe6   :  { %1823 = vmatmul.mubr.bf16.vlgmr.msra.gmra.mxu0 %v2751_v8  ;;  %v2548_v8 = vld [vmem:[#allocation5 + $0x48c] ss:$16 sps:$4 sm:$0xff]  }
  0xe7   :  { %1864 = vmatmul.mubr.bf16.vlgmr.msra.gmra.mxu1 %v2753_v9  ;;  %1873 = vmatpush1.bf16.msra.mxu0 %v2528_v28  ;;  %v2551_v9 = vld [vmem:[#allocation5 + $0x68c] ss:$16 sps:$4 sm:$0xff]  }
  0xe8   :  { %1914 = vmatpush1.bf16.msra.mxu1 %v2531_v29  ;;  %1874 = vmatprep.subr.bf16.mxu0 %v2536_v30 }
  0xe9   :  { %1915 = vmatprep.subr.bf16.mxu1 %v2539_v31  ;;  %1904 = vmatprep.mubr.bf16.mxu0 %v2757_v37  ;;  %v2552_v37 = vld [vmem:[#allocation5 + $0x468] ss:$16 sps:$4 sm:$0xff]  }
  0xea   :  { %1945 = vmatprep.mubr.bf16.mxu1 %v2759_v40  ;;  %v2555_v40 = vld [vmem:[#allocation5 + $0x668] ss:$16 sps:$4 sm:$0xff]  }
  0xeb   :  { %1875 = vmatpush1.bf16.msra.mxu0 %v2534_v32 }
  0xec   :  { %1916 = vmatpush1.bf16.msra.mxu1 %v2537_v33  ;;  %1876 = vmatprep.subr.bf16.mxu0 %v2542_v34 }
  0xed   :  { %1917 = vmatprep.subr.bf16.mxu1 %v2545_v35 }
  0xef   :  { %1877 = vmatpush1.bf16.msra.mxu0 %v2540_v36  ;;  %v326_v36 = vlaneseq }
  0xf0   :  { %1918 = vmatpush1.bf16.msra.mxu1 %v2543_v38  ;;  %1878 = vmatprep.subr.bf16.mxu0 %v2548_v8 }
  0xf1   :  { %1919 = vmatprep.subr.bf16.mxu1 %v2551_v9  ;;  %v327_v38 = vshrl.u32 %v326_v36, 7  ;;  %v324_v9 = vld [vmem:[#allocation7] sm:$0xf] }
  0xf3   :  { %1879 = vmatpush1.bf16.msra.mxu0 %v2546_v39  ;;  %v328_v8 = vsub.s32 0, %v327_v38  ;;  %v332_v39 = vsub.s32 1, %v327_v38 }
  0xf4   :  { %1920 = vmatpush1.bf16.msra.mxu1 %v2549_v49  ;;  %1880 = vmatprep.subr.bf16.mxu0 %v2554_v52 }
  0xf5   :  { %1921 = vmatprep.subr.bf16.mxu1 %v2557_v41  ;;  %v329_v49 = vrot.slane %v324_v9, %v328_v8  ;;  %v333_v52 = vrot.slane %v324_v9, %v332_v39 }
  0xf7   :  { %1881 = vmatpush1.bf16.msra.mxu0 %v2552_v37 }
  0xf8   :  { %1922 = vmatpush1.bf16.msra.mxu1 %v2555_v40  ;;  %1882 = vmatprep.subr.bf16.mxu0 %v2560_v42 }
  0xf9   :  { %1923 = vmatprep.subr.bf16.mxu1 %v2563_v43 }
  0xfb   :  { %1883 = vmatpush1.bf16.msra.mxu0 %v2558_v44 }
  0xfc   :  { %1924 = vmatpush1.bf16.msra.mxu1 %v2561_v45  ;;  %1884 = vmatprep.subr.bf16.mxu0 %v2566_v46 }
  0xfd   :  { %1925 = vmatprep.subr.bf16.mxu1 %v2569_v47 }
  0xff   :  { %1885 = vmatpush1.bf16.msra.mxu0 %v2564_v48 }
 0x100   :  { %1926 = vmatpush1.bf16.msra.mxu1 %v2567_v50  ;;  %1886 = vmatprep.subr.bf16.mxu0 %v2572_v51 }
 0x101   :  { %1927 = vmatprep.subr.bf16.mxu1 %v2575_v53 }
 0x103   :  { %1887 = vmatpush1.bf16.msra.mxu0 %v2570_v54 }
 0x104   :  { %1928 = vmatpush1.bf16.msra.mxu1 %v2573_v55  ;;  %1888 = vmatprep.subr.bf16.mxu0 %v2578_v56 }
 0x105   :  { %1929 = vmatprep.subr.bf16.mxu1 %v2581_v57 }
 0x107   :  { %1889 = vmatpush2.bf16.msra.mxu0 %v2576_v58 }
 0x108   :  { %1930 = vmatpush2.bf16.msra.mxu1 %v2579_v59  ;;  %1890 = vmatprep.subr.bf16.mxu0 %v2584_v60 }
 0x109   :  { %1931 = vmatprep.subr.bf16.mxu1 %v2587_v61 }
 0x10b   :  { %1891 = vmatpush2.bf16.msra.mxu0 %v2582_v62 }
 0x10c   :  { %1932 = vmatpush2.bf16.msra.mxu1 %v2585_v63  ;;  %1892 = vmatprep.subr.bf16.mxu0 %v2590_v0 }
 0x10d   :  { %1933 = vmatprep.subr.bf16.mxu1 %v2593_v1  ;;  %v336_v1 = vsub.s32 2, %v327_v38 }
 0x10f   :  { %1893 = vmatpush2.bf16.msra.mxu0 %v2588_v2  ;;  %v340_v2 = vsub.s32 3, %v327_v38 }
 0x110   :  { %1934 = vmatpush2.bf16.msra.mxu1 %v2591_v3  ;;  %1894 = vmatprep.subr.bf16.mxu0 %v2596_v4  ;;  %v337_v3 = vrot.slane %v324_v9, %v336_v1 }
 0x111   :  { %1935 = vmatprep.subr.bf16.mxu1 %v2599_v5  ;;  %v341_v4 = vrot.slane %v324_v9, %v340_v2 }
 0x113   :  { %1895 = vmatpush2.bf16.msra.mxu0 %v2594_v6 }
 0x114   :  { %1936 = vmatpush2.bf16.msra.mxu1 %v2597_v7  ;;  %1896 = vmatprep.subr.bf16.mxu0 %v2602_v10 }
 0x115   :  { %1937 = vmatprep.subr.bf16.mxu1 %v2605_v11 }
 0x117   :  { %1897 = vmatpush2.bf16.msra.mxu0 %v2600_v12 }
 0x118   :  { %1938 = vmatpush2.bf16.msra.mxu1 %v2603_v13  ;;  %1898 = vmatprep.subr.bf16.mxu0 %v2608_v14 }
 0x119   :  { %1939 = vmatprep.subr.bf16.mxu1 %v2611_v15 }
 0x11b   :  { %1899 = vmatpush2.bf16.msra.mxu0 %v2606_v16 }
 0x11c   :  { %1940 = vmatpush2.bf16.msra.mxu1 %v2609_v17  ;;  %1900 = vmatprep.subr.bf16.mxu0 %v2614_v18 }
 0x11d   :  { %1941 = vmatprep.subr.bf16.mxu1 %v2617_v19 }
 0x11f   :  { %1901 = vmatpush2.bf16.msra.mxu0 %v2612_v22 }
 0x120   :  { %1942 = vmatpush2.bf16.msra.mxu1 %v2615_v23  ;;  %1902 = vmatprep.subr.bf16.mxu0 %v2620_v24 }
 0x121   :  { %1943 = vmatprep.subr.bf16.mxu1 %v2623_v25 }
 0x123   :  { %1903 = vmatpush2.bf16.msra.mxu0 %v2618_v26 }
 0x124   :  { %1944 = vmatpush2.bf16.msra.mxu1 %v2621_v27 }
 0x126   :  { %v1660_v28 = vpop.f32.mrf.mxu0  ;;  %1905 = vmatmul.mubr.bf16.vlgmr.msra.gmra.mxu0 %v2763_v20 }
 0x127   :  { %v1701_v29 = vpop.f32.mrf.mxu1  ;;  %1946 = vmatmul.mubr.bf16.vlgmr.msra.gmra.mxu1 %v2765_v21  ;;  %v1661_v41 = vadd.f32 %v1660_v28, %v329_v49 }
 0x128   :  { %v1662_v30 = vpop.f32.mrf.mxu0 }
 0x129   :  { %v1703_v31 = vpop.f32.mrf.mxu1  ;;  %v1663_v37 = vadd.f32 %v1662_v30, %v333_v52  ;;  %v1702_v40 = vadd.f32 %v1701_v29, %v1661_v41 }
 0x12a   :  { %v1664_v32 = vpop.f32.mrf.mxu0 }
 0x12b   :  { %v1705_v33 = vpop.f32.mrf.mxu1  ;;  %v1704_v43 = vadd.f32 %v1703_v31, %v1663_v37 }
 0x12c   :  { %v1665_v34 = vpop.f32.mrf.mxu0 }
 0x12d   :  { %v1706_v35 = vpop.f32.mrf.mxu1 }
 0x166   :  { %v1742_v42 = vpop.f32.mrf.mxu0 }
 0x167   :  { %v1783_v20 = vpop.f32.mrf.mxu1  ;;  %v1743_v21 = vadd.f32 %v1742_v42, %v1702_v40 }
 0x168   :  { %v1744_v44 = vpop.f32.mrf.mxu0 }
 0x169   :  { %v1785_v45 = vpop.f32.mrf.mxu1  ;;  %v1784_v46 = vadd.f32 %v1783_v20, %v1743_v21  ;;  %v1745_v47 = vadd.f32 %v1744_v44, %v1704_v43 }
 0x16a   :  { %v1746_v48 = vpop.f32.mrf.mxu0 }
 0x16b   :  { %v1787_v50 = vpop.f32.mrf.mxu1  ;;  %v1954_v51 = vmax.f32 %v1784_v46, 0.0  ;;  %v1786_v53 = vadd.f32 %v1785_v45, %v1745_v47 }
 0x16c   :  { %v1747_v54 = vpop.f32.mrf.mxu0 }
 0x16d   :  { %v1788_v55 = vpop.f32.mrf.mxu1  ;;  %1958 = vst [vmem:[#allocation8] sm:$0xff] %v1954_v51  ;;  %v1955_v56 = vmax.f32 %v1786_v53, 0.0 }
 0x16f   :  { %1959 = vst [vmem:[#allocation8 + $0x8] sm:$0xff] %v1955_v56 }
 0x1a6   :  { %v1824_v57 = vpop.f32.mrf.mxu0 }
 0x1a7   :  { %v1865_v58 = vpop.f32.mrf.mxu1  ;;  %v1825_v5 = vadd.f32 %v1824_v57, %v337_v3 }
 0x1a8   :  { %v1826_v59 = vpop.f32.mrf.mxu0 }
 0x1a9   :  { %v1867_v60 = vpop.f32.mrf.mxu1  ;;  %v1827_v6 = vadd.f32 %v1826_v59, %v341_v4  ;;  %v1866_v7 = vadd.f32 %v1865_v58, %v1825_v5 }
 0x1aa   :  { %v1828_v61 = vpop.f32.mrf.mxu0 }
 0x1ab   :  { %v1869_v62 = vpop.f32.mrf.mxu1  ;;  %v1868_v12 = vadd.f32 %v1867_v60, %v1827_v6 }
 0x1ac   :  { %v1829_v63 = vpop.f32.mrf.mxu0 }
 0x1ad   :  { %v1870_v0 = vpop.f32.mrf.mxu1 }
 0x1e6   :  { %v1906_v10 = vpop.f32.mrf.mxu0 }
 0x1e7   :  { %v1947_v11 = vpop.f32.mrf.mxu1  ;;  %v1907_v13 = vadd.f32 %v1906_v10, %v1866_v7 }
 0x1e8   :  { %v1908_v14 = vpop.f32.mrf.mxu0 }
 0x1e9   :  { %v1949_v15 = vpop.f32.mrf.mxu1  ;;  %v1948_v16 = vadd.f32 %v1947_v11, %v1907_v13  ;;  %v1909_v17 = vadd.f32 %v1908_v14, %v1868_v12 }
 0x1ea   :  { %v1910_v18 = vpop.f32.mrf.mxu0 }
 0x1eb   :  { %v1951_v19 = vpop.f32.mrf.mxu1  ;;  %v1956_v22 = vmax.f32 %v1948_v16, 0.0  ;;  %v1950_v23 = vadd.f32 %v1949_v15, %v1909_v17 }
 0x1ec   :  { %v1911_v24 = vpop.f32.mrf.mxu0 }
 0x1ed   :  { %v1952_v25 = vpop.f32.mrf.mxu1  ;;  %1960 = vst [vmem:[#allocation8 + $0x10] sm:$0xff] %v1956_v22  ;;  %v1957_v26 = vmax.f32 %v1950_v23, 0.0 }
 0x1ef   :  { %1961 = vst [vmem:[#allocation8 + $0x18] sm:$0xff] %v1957_v26 }
 0x1f0   :  { %2695 = shalt.err (!%p2692_p5)
}
 0x1f1   :  { %1971 = dma.vmem_to_hbm [thread:$0]  %s1969_s2, 512, %s2783_s3, [#allocation4]  }
 0x1f2   :  { %2708 = dma.done.wait [#allocation4], 512  }
 0x1f3   :  { %2709 = vsyncadd [#allocation4], 4294966784 }
 0x1f4   :  { %1975 = vsyncpa [#allocation3], 1 }
 0x1f5   :  { %1976 = vsyncpa [#allocation6], 1 }
 0x1f6   :  { %1977 = vsyncpa [#allocation4], 1 }

</bundles_post_ra>
